<compile_context>
chip_gen: v7x
topology: tpu7x:2x2x1
jax: 0.10.0
libtpu: 0.0.40
codegen_flags: <defaults>
</compile_context>

<pallas_src>
import functools

import jax
import jax.numpy as jnp
from jax.experimental import pallas as pl
from jax.experimental.pallas import tpu as pltpu


def _make_kernel(M, D, scale):
    def kernel(*refs):
        mod_refs = refs[:M]
        wq_ref, bq_ref, wk_ref, bk_ref, fused_ref, attn_ref = refs[M:]

        mods = [r[...] for r in mod_refs]              # M x (TB, D), compute dtype
        TB = mods[0].shape[0]

        # ---- fused Q/K projections: one (M*TB, D) @ (D, D) matmul per weight.
        # Rows are modality-major: rows [i*TB:(i+1)*TB] belong to modality i.
        x = jnp.concatenate(mods, axis=0)              # (M*TB, D)
        q_all = jnp.dot(x, wq_ref[...],
                        preferred_element_type=jnp.float32) + bq_ref[...]
        k_all = jnp.dot(x, wk_ref[...],
                        preferred_element_type=jnp.float32) + bk_ref[...]
        qs = [q_all[i * TB:(i + 1) * TB, :] for i in range(M)]   # M x (TB, D) f32
        ks = [k_all[i * TB:(i + 1) * TB, :] for i in range(M)]

        mods_f32 = [m.astype(jnp.float32) for m in mods]

        # ---- attention scores + softmax.
        # scores[b, i, j] = <q_i[b], k_j[b]> * scale   (M is tiny -> VPU + lane
        # reduce over D, not TB serial 4x4 MXU matmuls).
        attn_rows = []                                  # attn_rows[i] = attn[:, i, :]
        for i in range(M):
            s = jnp.concatenate(
                [jnp.sum(qs[i] * ks[j], axis=-1, keepdims=True) for j in range(M)],
                axis=-1) * scale                        # (TB, M)
            s = s - jnp.max(s, axis=-1, keepdims=True)  # stable softmax
            e = jnp.exp(s)
            denom = jnp.sum(e, axis=-1, keepdims=True)
            attn_rows.append(e * pl.reciprocal(denom, approx=True))   # (TB, M)

        # ---- fused = colsum_i(attn)[:, j] * modality_j, summed over j.
        # (weighted_features.sum(dim=1) == sum_j (sum_i attn[:, i, j]) * c[:, j, :])
        col_w = attn_rows[0]
        for i in range(1, M):
            col_w = col_w + attn_rows[i]                # (TB, M)
        fused = col_w[:, 0:1] * mods_f32[0]
        for j in range(1, M):
            fused = fused + col_w[:, j:j + 1] * mods_f32[j]           # (TB, D)

        fused_ref[...] = fused
        # Single flattened store: attn_flat[:, i*M + j] = attn[:, i, j].
        attn_ref[...] = jnp.concatenate(attn_rows, axis=-1)            # (TB, M*M)

    return kernel


@functools.partial(jax.jit, static_argnames=("compute_dtype", "block_b"))
def _attention_weighting_impl(mods, wq, bq, wk, bk, *, compute_dtype, block_b):
    M = len(mods)
    B, D = mods[0].shape
    scale = 1.0 / (float(D) ** 0.5)

    # Host-side (per-call, cheap) prep: pre-transposed weights, 2-D biases.
    wq_t = jnp.asarray(wq, compute_dtype).T             # (in, out)
    wk_t = jnp.asarray(wk, compute_dtype).T
    bq2 = jnp.asarray(bq, jnp.float32).reshape(1, D)
    bk2 = jnp.asarray(bk, jnp.float32).reshape(1, D)

    # Batch tiling: TB elements per grid step; pad B up to a multiple of TB.
    TB = min(block_b, B)
    grid_b = pl.cdiv(B, TB)
    B_pad = grid_b * TB
    mods = [jnp.asarray(m, compute_dtype) for m in mods]
    if B_pad != B:
        mods = [jnp.pad(m, ((0, B_pad - B), (0, 0))) for m in mods]

    kernel = _make_kernel(M, D, scale)

    in_specs = (
        [pl.BlockSpec((TB, D), lambda b: (b, 0)) for _ in range(M)]   # modalities
        + [pl.BlockSpec((D, D), lambda b: (0, 0)),                    # Wq^T
           pl.BlockSpec((1, D), lambda b: (0, 0)),                    # bq
           pl.BlockSpec((D, D), lambda b: (0, 0)),                    # Wk^T
           pl.BlockSpec((1, D), lambda b: (0, 0))]                    # bk
    )
    out_specs = [
        pl.BlockSpec((TB, D), lambda b: (b, 0)),                      # fused
        pl.BlockSpec((TB, M * M), lambda b: (b, 0)),                  # attn (flat)
    ]

    fused, attn_flat = pl.pallas_call(
        kernel,
        out_shape=(
            jax.ShapeDtypeStruct((B_pad, D), jnp.float32),
            jax.ShapeDtypeStruct((B_pad, M * M), jnp.float32),
        ),
        grid_spec=pltpu.PrefetchScalarGridSpec(
            num_scalar_prefetch=0,
            grid=(grid_b,),
            in_specs=in_specs,
            out_specs=out_specs,
        ),
        compiler_params=pltpu.CompilerParams(
            dimension_semantics=("parallel",),
            # Usage here is tiny; explicit cap documents the v7x 64-MiB /
            # default-scoped-VMEM consideration for larger TB or D.
            vmem_limit_bytes=32 * 1024 * 1024,
        ),
    )(*mods, wq_t, bq2, wk_t, bk2)

    attn = attn_flat.reshape(B_pad, M, M)
    return fused[:B], attn[:B]


def attention_weighting(modalities, wq, bq, wk, bk, *,
                        compute_dtype=jnp.float32, block_b=128):
    """modalities: list of (B, D) arrays. Returns (fused (B, D), attn (B, M, M))."""
    return _attention_weighting_impl(tuple(modalities), wq, bq, wk, bk,
                                     compute_dtype=compute_dtype, block_b=block_b)


def _reference(modalities, wq, bq, wk, bk):
    combined = jnp.stack(modalities, axis=1)
    q = combined @ wq.T + bq
    k = combined @ wk.T + bk
    scores = jnp.einsum("bmd,bnd->bmn", q, k) / (q.shape[-1] ** 0.5)
    attn = jax.nn.softmax(scores, axis=-1)
    weighted = jnp.einsum("bmn,bnd->bmd", attn, combined)
    return weighted.sum(axis=1), attn


if __name__ == "__main__":
    M, D = 4, 32          # 4 modalities, feature_dim = 32

    key = jax.random.PRNGKey(0)
    k_mods, k_wq, k_bq, k_wk, k_bk, k_mods2 = jax.random.split(key, 6)

    # nn.Linear(D, D)-style params: W (out, in), b (out,).
    bound = 1.0 / (D ** 0.5)
    wq = jax.random.uniform(k_wq, (D, D), jnp.float32, -bound, bound)
    bq = jax.random.uniform(k_bq, (D,), jnp.float32, -bound, bound)
    wk = jax.random.uniform(k_wk, (D, D), jnp.float32, -bound, bound)
    bk = jax.random.uniform(k_bk, (D,), jnp.float32, -bound, bound)
    # NOTE: the module also defines self.value, but forward() never uses it.

    # --- small check (B = 2, single grid step) -------------------------------
    B = 2
    modalities = list(jax.random.normal(k_mods, (M, B, D), jnp.float32))
    fused, attn = attention_weighting(modalities, wq, bq, wk, bk)
    jax.block_until_ready((fused, attn))
    ref_fused, ref_attn = _reference(modalities, wq, bq, wk, bk)
    assert fused.shape == (B, D) and attn.shape == (B, M, M)
    assert jnp.allclose(fused, ref_fused, atol=5e-3, rtol=5e-3)
    assert jnp.allclose(attn, ref_attn, atol=5e-3, rtol=5e-3)

    # --- larger batch: exercises TB=128 tiling, padding, multi-step grid -----
    B2 = 300
    modalities2 = list(jax.random.normal(k_mods2, (M, B2, D), jnp.float32))
    fused2, attn2 = attention_weighting(modalities2, wq, bq, wk, bk)
    jax.block_until_ready((fused2, attn2))
    ref_fused2, ref_attn2 = _reference(modalities2, wq, bq, wk, bk)
    assert fused2.shape == (B2, D) and attn2.shape == (B2, M, M)
    assert jnp.allclose(fused2, ref_fused2, atol=5e-3, rtol=5e-3)
    assert jnp.allclose(attn2, ref_attn2, atol=5e-3, rtol=5e-3)

    # --- bf16-traffic variant (f32 accumulation in-kernel): smoke run --------
    fused_bf, attn_bf = attention_weighting(modalities2, wq, bq, wk, bk,
                                            compute_dtype=jnp.bfloat16)
    jax.block_until_ready((fused_bf, attn_bf))
    assert bool(jnp.isfinite(fused_bf).all()) and bool(jnp.isfinite(attn_bf).all())

    print("KERNEL_OK")
</pallas_src>

<mosaic_0001>
module attributes {stable_mosaic.version = 11 : i64} {
  func.func @kernel(%arg0: i32, %arg1: memref<2x32xf32, #tpu.memory_space<vmem>>, %arg2: memref<2x32xf32, #tpu.memory_space<vmem>>, %arg3: memref<2x32xf32, #tpu.memory_space<vmem>>, %arg4: memref<2x32xf32, #tpu.memory_space<vmem>>, %arg5: memref<32x32xf32, #tpu.memory_space<vmem>>, %arg6: memref<1x32xf32, #tpu.memory_space<vmem>>, %arg7: memref<32x32xf32, #tpu.memory_space<vmem>>, %arg8: memref<1x32xf32, #tpu.memory_space<vmem>>, %arg9: memref<2x32xf32, #tpu.memory_space<vmem>>, %arg10: memref<2x16xf32, #tpu.memory_space<vmem>>) attributes {dimension_semantics = [#tpu.dimension_semantics<parallel>], iteration_bounds = array<i64: 1>, scalar_prefetch = 0 : i64, scratch_operands = 0 : i64, tpu.core_type = #tpu.core_type<tc>, window_params = [{transform_indices = @transform_0, window_bounds = array<i64: 2, 32>}, {transform_indices = @transform_1, window_bounds = array<i64: 2, 32>}, {transform_indices = @transform_2, window_bounds = array<i64: 2, 32>}, {transform_indices = @transform_3, window_bounds = array<i64: 2, 32>}, {pipeline_mode = #tpu.pipeline_mode<synchronous>, transform_indices = @transform_4, window_bounds = array<i64: 32, 32>}, {pipeline_mode = #tpu.pipeline_mode<synchronous>, transform_indices = @transform_5, window_bounds = array<i64: 1, 32>}, {pipeline_mode = #tpu.pipeline_mode<synchronous>, transform_indices = @transform_6, window_bounds = array<i64: 32, 32>}, {pipeline_mode = #tpu.pipeline_mode<synchronous>, transform_indices = @transform_7, window_bounds = array<i64: 1, 32>}, {transform_indices = @transform_8, window_bounds = array<i64: 2, 32>}, {transform_indices = @transform_9, window_bounds = array<i64: 2, 16>}]} {
    %c0 = arith.constant 0 : index
    %c0_0 = arith.constant 0 : index
    %0 = vector.load %arg1[%c0, %c0_0] : memref<2x32xf32, #tpu.memory_space<vmem>>, vector<2x32xf32>
    %c0_1 = arith.constant 0 : index
    %c0_2 = arith.constant 0 : index
    %1 = vector.load %arg2[%c0_1, %c0_2] : memref<2x32xf32, #tpu.memory_space<vmem>>, vector<2x32xf32>
    %c0_3 = arith.constant 0 : index
    %c0_4 = arith.constant 0 : index
    %2 = vector.load %arg3[%c0_3, %c0_4] : memref<2x32xf32, #tpu.memory_space<vmem>>, vector<2x32xf32>
    %c0_5 = arith.constant 0 : index
    %c0_6 = arith.constant 0 : index
    %3 = vector.load %arg4[%c0_5, %c0_6] : memref<2x32xf32, #tpu.memory_space<vmem>>, vector<2x32xf32>
    %4 = tpu.concatenate %0, %1, %2, %3 in 0 : vector<2x32xf32>, vector<2x32xf32>, vector<2x32xf32>, vector<2x32xf32> -> vector<8x32xf32>
    %c0_7 = arith.constant 0 : index
    %c0_8 = arith.constant 0 : index
    %5 = vector.load %arg5[%c0_7, %c0_8] : memref<32x32xf32, #tpu.memory_space<vmem>>, vector<32x32xf32>
    %cst = arith.constant dense<0.000000e+00> : vector<8x32xf32>
    %6 = tpu.matmul %4, %5, %cst {dimension_numbers = #tpu.dot_dimension_numbers<[1], [0], [0], [1], [0, 0, 1, 1], [], []>} : vector<8x32xf32>, vector<32x32xf32>, vector<8x32xf32> -> vector<8x32xf32>
    %c0_9 = arith.constant 0 : index
    %c0_10 = arith.constant 0 : index
    %7 = vector.load %arg6[%c0_9, %c0_10] : memref<1x32xf32, #tpu.memory_space<vmem>>, vector<1x32xf32>
    %8 = vector.broadcast %7 : vector<1x32xf32> to vector<8x32xf32>
    %9 = arith.addf %6, %8 : vector<8x32xf32>
    %c0_11 = arith.constant 0 : index
    %c0_12 = arith.constant 0 : index
    %10 = vector.load %arg7[%c0_11, %c0_12] : memref<32x32xf32, #tpu.memory_space<vmem>>, vector<32x32xf32>
    %cst_13 = arith.constant dense<0.000000e+00> : vector<8x32xf32>
    %11 = tpu.matmul %4, %10, %cst_13 {dimension_numbers = #tpu.dot_dimension_numbers<[1], [0], [0], [1], [0, 0, 1, 1], [], []>} : vector<8x32xf32>, vector<32x32xf32>, vector<8x32xf32> -> vector<8x32xf32>
    %c0_14 = arith.constant 0 : index
    %c0_15 = arith.constant 0 : index
    %12 = vector.load %arg8[%c0_14, %c0_15] : memref<1x32xf32, #tpu.memory_space<vmem>>, vector<1x32xf32>
    %13 = vector.broadcast %12 : vector<1x32xf32> to vector<8x32xf32>
    %14 = arith.addf %11, %13 : vector<8x32xf32>
    %15 = vector.extract_strided_slice %9 {offsets = [0, 0], sizes = [2, 32], strides = [1, 1]} : vector<8x32xf32> to vector<2x32xf32>
    %16 = vector.extract_strided_slice %9 {offsets = [2, 0], sizes = [2, 32], strides = [1, 1]} : vector<8x32xf32> to vector<2x32xf32>
    %17 = vector.extract_strided_slice %9 {offsets = [4, 0], sizes = [2, 32], strides = [1, 1]} : vector<8x32xf32> to vector<2x32xf32>
    %18 = vector.extract_strided_slice %9 {offsets = [6, 0], sizes = [2, 32], strides = [1, 1]} : vector<8x32xf32> to vector<2x32xf32>
    %19 = vector.extract_strided_slice %14 {offsets = [0, 0], sizes = [2, 32], strides = [1, 1]} : vector<8x32xf32> to vector<2x32xf32>
    %20 = vector.extract_strided_slice %14 {offsets = [2, 0], sizes = [2, 32], strides = [1, 1]} : vector<8x32xf32> to vector<2x32xf32>
    %21 = vector.extract_strided_slice %14 {offsets = [4, 0], sizes = [2, 32], strides = [1, 1]} : vector<8x32xf32> to vector<2x32xf32>
    %22 = vector.extract_strided_slice %14 {offsets = [6, 0], sizes = [2, 32], strides = [1, 1]} : vector<8x32xf32> to vector<2x32xf32>
    %23 = arith.mulf %15, %19 : vector<2x32xf32>
    %cst_16 = arith.constant dense<0.000000e+00> : vector<2xf32>
    %24 = vector.multi_reduction <add>, %23, %cst_16 [1] : vector<2x32xf32> to vector<2xf32>
    %25 = vector.shape_cast %24 : vector<2xf32> to vector<2x1xf32>
    %26 = arith.mulf %15, %20 : vector<2x32xf32>
    %cst_17 = arith.constant dense<0.000000e+00> : vector<2xf32>
    %27 = vector.multi_reduction <add>, %26, %cst_17 [1] : vector<2x32xf32> to vector<2xf32>
    %28 = vector.shape_cast %27 : vector<2xf32> to vector<2x1xf32>
    %29 = arith.mulf %15, %21 : vector<2x32xf32>
    %cst_18 = arith.constant dense<0.000000e+00> : vector<2xf32>
    %30 = vector.multi_reduction <add>, %29, %cst_18 [1] : vector<2x32xf32> to vector<2xf32>
    %31 = vector.shape_cast %30 : vector<2xf32> to vector<2x1xf32>
    %32 = arith.mulf %15, %22 : vector<2x32xf32>
    %cst_19 = arith.constant dense<0.000000e+00> : vector<2xf32>
    %33 = vector.multi_reduction <add>, %32, %cst_19 [1] : vector<2x32xf32> to vector<2xf32>
    %34 = vector.shape_cast %33 : vector<2xf32> to vector<2x1xf32>
    %35 = tpu.concatenate %25, %28, %31, %34 in 1 : vector<2x1xf32>, vector<2x1xf32>, vector<2x1xf32>, vector<2x1xf32> -> vector<2x4xf32>
    %cst_20 = arith.constant 0.176776692 : f32
    %36 = vector.broadcast %cst_20 : f32 to vector<2x4xf32>
    %37 = arith.mulf %35, %36 : vector<2x4xf32>
    %cst_21 = arith.constant dense<0xFF800000> : vector<2xf32>
    %38 = vector.multi_reduction <maximumf>, %37, %cst_21 [1] : vector<2x4xf32> to vector<2xf32>
    %39 = vector.shape_cast %38 : vector<2xf32> to vector<2x1xf32>
    %40 = vector.broadcast %39 : vector<2x1xf32> to vector<2x4xf32>
    %41 = arith.subf %37, %40 : vector<2x4xf32>
    %42 = math.exp %41 : vector<2x4xf32>
    %cst_22 = arith.constant dense<0.000000e+00> : vector<2xf32>
    %43 = vector.multi_reduction <add>, %42, %cst_22 [1] : vector<2x4xf32> to vector<2xf32>
    %44 = vector.shape_cast %43 : vector<2xf32> to vector<2x1xf32>
    %45 = tpu.reciprocal %44 {approx = true} : vector<2x1xf32> -> vector<2x1xf32>
    %46 = vector.broadcast %45 : vector<2x1xf32> to vector<2x4xf32>
    %47 = arith.mulf %42, %46 : vector<2x4xf32>
    %48 = arith.mulf %16, %19 : vector<2x32xf32>
    %cst_23 = arith.constant dense<0.000000e+00> : vector<2xf32>
    %49 = vector.multi_reduction <add>, %48, %cst_23 [1] : vector<2x32xf32> to vector<2xf32>
    %50 = vector.shape_cast %49 : vector<2xf32> to vector<2x1xf32>
    %51 = arith.mulf %16, %20 : vector<2x32xf32>
    %cst_24 = arith.constant dense<0.000000e+00> : vector<2xf32>
    %52 = vector.multi_reduction <add>, %51, %cst_24 [1] : vector<2x32xf32> to vector<2xf32>
    %53 = vector.shape_cast %52 : vector<2xf32> to vector<2x1xf32>
    %54 = arith.mulf %16, %21 : vector<2x32xf32>
    %cst_25 = arith.constant dense<0.000000e+00> : vector<2xf32>
    %55 = vector.multi_reduction <add>, %54, %cst_25 [1] : vector<2x32xf32> to vector<2xf32>
    %56 = vector.shape_cast %55 : vector<2xf32> to vector<2x1xf32>
    %57 = arith.mulf %16, %22 : vector<2x32xf32>
    %cst_26 = arith.constant dense<0.000000e+00> : vector<2xf32>
    %58 = vector.multi_reduction <add>, %57, %cst_26 [1] : vector<2x32xf32> to vector<2xf32>
    %59 = vector.shape_cast %58 : vector<2xf32> to vector<2x1xf32>
    %60 = tpu.concatenate %50, %53, %56, %59 in 1 : vector<2x1xf32>, vector<2x1xf32>, vector<2x1xf32>, vector<2x1xf32> -> vector<2x4xf32>
    %cst_27 = arith.constant 0.176776692 : f32
    %61 = vector.broadcast %cst_27 : f32 to vector<2x4xf32>
    %62 = arith.mulf %60, %61 : vector<2x4xf32>
    %cst_28 = arith.constant dense<0xFF800000> : vector<2xf32>
    %63 = vector.multi_reduction <maximumf>, %62, %cst_28 [1] : vector<2x4xf32> to vector<2xf32>
    %64 = vector.shape_cast %63 : vector<2xf32> to vector<2x1xf32>
    %65 = vector.broadcast %64 : vector<2x1xf32> to vector<2x4xf32>
    %66 = arith.subf %62, %65 : vector<2x4xf32>
    %67 = math.exp %66 : vector<2x4xf32>
    %cst_29 = arith.constant dense<0.000000e+00> : vector<2xf32>
    %68 = vector.multi_reduction <add>, %67, %cst_29 [1] : vector<2x4xf32> to vector<2xf32>
    %69 = vector.shape_cast %68 : vector<2xf32> to vector<2x1xf32>
    %70 = tpu.reciprocal %69 {approx = true} : vector<2x1xf32> -> vector<2x1xf32>
    %71 = vector.broadcast %70 : vector<2x1xf32> to vector<2x4xf32>
    %72 = arith.mulf %67, %71 : vector<2x4xf32>
    %73 = arith.mulf %17, %19 : vector<2x32xf32>
    %cst_30 = arith.constant dense<0.000000e+00> : vector<2xf32>
    %74 = vector.multi_reduction <add>, %73, %cst_30 [1] : vector<2x32xf32> to vector<2xf32>
    %75 = vector.shape_cast %74 : vector<2xf32> to vector<2x1xf32>
    %76 = arith.mulf %17, %20 : vector<2x32xf32>
    %cst_31 = arith.constant dense<0.000000e+00> : vector<2xf32>
    %77 = vector.multi_reduction <add>, %76, %cst_31 [1] : vector<2x32xf32> to vector<2xf32>
    %78 = vector.shape_cast %77 : vector<2xf32> to vector<2x1xf32>
    %79 = arith.mulf %17, %21 : vector<2x32xf32>
    %cst_32 = arith.constant dense<0.000000e+00> : vector<2xf32>
    %80 = vector.multi_reduction <add>, %79, %cst_32 [1] : vector<2x32xf32> to vector<2xf32>
    %81 = vector.shape_cast %80 : vector<2xf32> to vector<2x1xf32>
    %82 = arith.mulf %17, %22 : vector<2x32xf32>
    %cst_33 = arith.constant dense<0.000000e+00> : vector<2xf32>
    %83 = vector.multi_reduction <add>, %82, %cst_33 [1] : vector<2x32xf32> to vector<2xf32>
    %84 = vector.shape_cast %83 : vector<2xf32> to vector<2x1xf32>
    %85 = tpu.concatenate %75, %78, %81, %84 in 1 : vector<2x1xf32>, vector<2x1xf32>, vector<2x1xf32>, vector<2x1xf32> -> vector<2x4xf32>
    %cst_34 = arith.constant 0.176776692 : f32
    %86 = vector.broadcast %cst_34 : f32 to vector<2x4xf32>
    %87 = arith.mulf %85, %86 : vector<2x4xf32>
    %cst_35 = arith.constant dense<0xFF800000> : vector<2xf32>
    %88 = vector.multi_reduction <maximumf>, %87, %cst_35 [1] : vector<2x4xf32> to vector<2xf32>
    %89 = vector.shape_cast %88 : vector<2xf32> to vector<2x1xf32>
    %90 = vector.broadcast %89 : vector<2x1xf32> to vector<2x4xf32>
    %91 = arith.subf %87, %90 : vector<2x4xf32>
    %92 = math.exp %91 : vector<2x4xf32>
    %cst_36 = arith.constant dense<0.000000e+00> : vector<2xf32>
    %93 = vector.multi_reduction <add>, %92, %cst_36 [1] : vector<2x4xf32> to vector<2xf32>
    %94 = vector.shape_cast %93 : vector<2xf32> to vector<2x1xf32>
    %95 = tpu.reciprocal %94 {approx = true} : vector<2x1xf32> -> vector<2x1xf32>
    %96 = vector.broadcast %95 : vector<2x1xf32> to vector<2x4xf32>
    %97 = arith.mulf %92, %96 : vector<2x4xf32>
    %98 = arith.mulf %18, %19 : vector<2x32xf32>
    %cst_37 = arith.constant dense<0.000000e+00> : vector<2xf32>
    %99 = vector.multi_reduction <add>, %98, %cst_37 [1] : vector<2x32xf32> to vector<2xf32>
    %100 = vector.shape_cast %99 : vector<2xf32> to vector<2x1xf32>
    %101 = arith.mulf %18, %20 : vector<2x32xf32>
    %cst_38 = arith.constant dense<0.000000e+00> : vector<2xf32>
    %102 = vector.multi_reduction <add>, %101, %cst_38 [1] : vector<2x32xf32> to vector<2xf32>
    %103 = vector.shape_cast %102 : vector<2xf32> to vector<2x1xf32>
    %104 = arith.mulf %18, %21 : vector<2x32xf32>
    %cst_39 = arith.constant dense<0.000000e+00> : vector<2xf32>
    %105 = vector.multi_reduction <add>, %104, %cst_39 [1] : vector<2x32xf32> to vector<2xf32>
    %106 = vector.shape_cast %105 : vector<2xf32> to vector<2x1xf32>
    %107 = arith.mulf %18, %22 : vector<2x32xf32>
    %cst_40 = arith.constant dense<0.000000e+00> : vector<2xf32>
    %108 = vector.multi_reduction <add>, %107, %cst_40 [1] : vector<2x32xf32> to vector<2xf32>
    %109 = vector.shape_cast %108 : vector<2xf32> to vector<2x1xf32>
    %110 = tpu.concatenate %100, %103, %106, %109 in 1 : vector<2x1xf32>, vector<2x1xf32>, vector<2x1xf32>, vector<2x1xf32> -> vector<2x4xf32>
    %cst_41 = arith.constant 0.176776692 : f32
    %111 = vector.broadcast %cst_41 : f32 to vector<2x4xf32>
    %112 = arith.mulf %110, %111 : vector<2x4xf32>
    %cst_42 = arith.constant dense<0xFF800000> : vector<2xf32>
    %113 = vector.multi_reduction <maximumf>, %112, %cst_42 [1] : vector<2x4xf32> to vector<2xf32>
    %114 = vector.shape_cast %113 : vector<2xf32> to vector<2x1xf32>
    %115 = vector.broadcast %114 : vector<2x1xf32> to vector<2x4xf32>
    %116 = arith.subf %112, %115 : vector<2x4xf32>
    %117 = math.exp %116 : vector<2x4xf32>
    %cst_43 = arith.constant dense<0.000000e+00> : vector<2xf32>
    %118 = vector.multi_reduction <add>, %117, %cst_43 [1] : vector<2x4xf32> to vector<2xf32>
    %119 = vector.shape_cast %118 : vector<2xf32> to vector<2x1xf32>
    %120 = tpu.reciprocal %119 {approx = true} : vector<2x1xf32> -> vector<2x1xf32>
    %121 = vector.broadcast %120 : vector<2x1xf32> to vector<2x4xf32>
    %122 = arith.mulf %117, %121 : vector<2x4xf32>
    %123 = arith.addf %47, %72 : vector<2x4xf32>
    %124 = arith.addf %123, %97 : vector<2x4xf32>
    %125 = arith.addf %124, %122 : vector<2x4xf32>
    %126 = vector.extract_strided_slice %125 {offsets = [0, 0], sizes = [2, 1], strides = [1, 1]} : vector<2x4xf32> to vector<2x1xf32>
    %127 = vector.broadcast %126 : vector<2x1xf32> to vector<2x32xf32>
    %128 = arith.mulf %127, %0 : vector<2x32xf32>
    %129 = vector.extract_strided_slice %125 {offsets = [0, 1], sizes = [2, 1], strides = [1, 1]} : vector<2x4xf32> to vector<2x1xf32>
    %130 = vector.broadcast %129 : vector<2x1xf32> to vector<2x32xf32>
    %131 = arith.mulf %130, %1 : vector<2x32xf32>
    %132 = arith.addf %128, %131 : vector<2x32xf32>
    %133 = vector.extract_strided_slice %125 {offsets = [0, 2], sizes = [2, 1], strides = [1, 1]} : vector<2x4xf32> to vector<2x1xf32>
    %134 = vector.broadcast %133 : vector<2x1xf32> to vector<2x32xf32>
    %135 = arith.mulf %134, %2 : vector<2x32xf32>
    %136 = arith.addf %132, %135 : vector<2x32xf32>
    %137 = vector.extract_strided_slice %125 {offsets = [0, 3], sizes = [2, 1], strides = [1, 1]} : vector<2x4xf32> to vector<2x1xf32>
    %138 = vector.broadcast %137 : vector<2x1xf32> to vector<2x32xf32>
    %139 = arith.mulf %138, %3 : vector<2x32xf32>
    %140 = arith.addf %136, %139 : vector<2x32xf32>
    %c0_44 = arith.constant 0 : index
    %c0_45 = arith.constant 0 : index
    %141 = vector.load %arg9[%c0_44, %c0_45] : memref<2x32xf32, #tpu.memory_space<vmem>>, vector<2x32xf32>
    tpu.vector_store %arg9[%c0_44, %c0_45], %140 {strides = array<i32>} : memref<2x32xf32, #tpu.memory_space<vmem>>, vector<2x32xf32>,
    %142 = tpu.concatenate %47, %72, %97, %122 in 1 : vector<2x4xf32>, vector<2x4xf32>, vector<2x4xf32>, vector<2x4xf32> -> vector<2x16xf32>
    %c0_46 = arith.constant 0 : index
    %c0_47 = arith.constant 0 : index
    %143 = vector.load %arg10[%c0_46, %c0_47] : memref<2x16xf32, #tpu.memory_space<vmem>>, vector<2x16xf32>
    tpu.vector_store %arg10[%c0_46, %c0_47], %142 {strides = array<i32>} : memref<2x16xf32, #tpu.memory_space<vmem>>, vector<2x16xf32>,
    return
  }
  func.func @transform_0(%arg0: i32) -> (i32, i32) {
    %c0_i32 = arith.constant 0 : i32
    %c0_i32_0 = arith.constant 0 : i32
    return %arg0, %c0_i32 : i32, i32
  }
  func.func @transform_1(%arg0: i32) -> (i32, i32) {
    %c0_i32 = arith.constant 0 : i32
    %c0_i32_0 = arith.constant 0 : i32
    return %arg0, %c0_i32 : i32, i32
  }
  func.func @transform_2(%arg0: i32) -> (i32, i32) {
    %c0_i32 = arith.constant 0 : i32
    %c0_i32_0 = arith.constant 0 : i32
    return %arg0, %c0_i32 : i32, i32
  }
  func.func @transform_3(%arg0: i32) -> (i32, i32) {
    %c0_i32 = arith.constant 0 : i32
    %c0_i32_0 = arith.constant 0 : i32
    return %arg0, %c0_i32 : i32, i32
  }
  func.func @transform_4(%arg0: i32) -> (i32, i32) {
    %c0_i32 = arith.constant 0 : i32
    %c0_i32_0 = arith.constant 0 : i32
    %c0_i32_1 = arith.constant 0 : i32
    return %c0_i32, %c0_i32_0 : i32, i32
  }
  func.func @transform_5(%arg0: i32) -> (i32, i32) {
    %c0_i32 = arith.constant 0 : i32
    %c0_i32_0 = arith.constant 0 : i32
    %c0_i32_1 = arith.constant 0 : i32
    return %c0_i32, %c0_i32_0 : i32, i32
  }
  func.func @transform_6(%arg0: i32) -> (i32, i32) {
    %c0_i32 = arith.constant 0 : i32
    %c0_i32_0 = arith.constant 0 : i32
    %c0_i32_1 = arith.constant 0 : i32
    return %c0_i32, %c0_i32_0 : i32, i32
  }
  func.func @transform_7(%arg0: i32) -> (i32, i32) {
    %c0_i32 = arith.constant 0 : i32
    %c0_i32_0 = arith.constant 0 : i32
    %c0_i32_1 = arith.constant 0 : i32
    return %c0_i32, %c0_i32_0 : i32, i32
  }
  func.func @transform_8(%arg0: i32) -> (i32, i32) {
    %c0_i32 = arith.constant 0 : i32
    %c0_i32_0 = arith.constant 0 : i32
    return %arg0, %c0_i32 : i32, i32
  }
  func.func @transform_9(%arg0: i32) -> (i32, i32) {
    %c0_i32 = arith.constant 0 : i32
    %c0_i32_0 = arith.constant 0 : i32
    return %arg0, %c0_i32 : i32, i32
  }
}

</mosaic_0001>

<bundles_post_ra>
// kernel: _attention_weighting_impl.1
= control target key start
LH: loop header
LB: loop body
LE: loop exit
PB: predicated region body
PF: predicated region fallthrough
CT: control target
= control target key end

     0   :  { %v523_v3 = vmov 0.0|0.0   ;;  %vm524_vm0 = vmmov 0   ;;  %v525_v11 = vmov 0.0   ;;  %vm45_vm1 = vcmask 1041408   ;;  %s692_s0 = inlined_call_operand.vmem [shape: f32[2,32], index: 0, kind: input, shape index: {}]   ;;  %s693_s1 = inlined_call_operand.vmem [shape: f32[2,32], index: 1, kind: input, shape index: {}]   ;;  %s694_s2 = inlined_call_operand.vmem [shape: f32[2,32], index: 2, kind: input, shape index: {}]   ;;  %s695_s3 = inlined_call_operand.vmem [shape: f32[2,32], index: 3, kind: input, shape index: {}]   ;;  %s696_s4 = inlined_call_operand.vmem [shape: f32[32,32], index: 4, kind: input, shape index: {}]   ;;  %s697_s5 = inlined_call_operand.vmem [shape: f32[1,32], index: 5, kind: input, shape index: {}]   ;;  %s698_s6 = inlined_call_operand.vmem [shape: f32[32,32], index: 6, kind: input, shape index: {}]   ;;  %s699_s7 = inlined_call_operand.vmem [shape: f32[1,32], index: 7, kind: input, shape index: {}]   ;;  %s700_s8 = inlined_call_operand.hbm [shape: f32[2,32], index: 8, kind: output, shape index: {0}]   ;;  %s701_s9 = inlined_call_operand.vmem [shape: f32[2,16], index: 9, kind: output, shape index: {1}]  }
   0x1   :  { %v51_v0 = vld [vmem:[%s696_s4] sm:$0xff]  ;;  %v52_v1 = vld [vmem:[%s696_s4 + $0x8] sm:$0xff]  ;;  %455 = vmatprep.subr.bf16.mxu0 %v523_v3  ;;  %461 = vmatprep.subr.bf16.mxu1 %v523_v3  ;;  %v53_v6 = vld [vmem:[%s696_s4 + $0x10] sm:$0xff]  ;;  %vm47_vm2 = vcmask 1043456   ;;  %vm49_vm3 = vcmask 1045504  }
   0x2   :  { %v136_v2 = vld [vmem:[%s698_s6] sm:$0xff]  ;;  %v456_v4 = vpack.c.bf16 %v52_v1, %v51_v0  ;;  %v137_v5 = vld [vmem:[%s698_s6 + $0x8] sm:$0xff]  ;;  %v54_v7 = vld [vmem:[%s696_s4 + $0x18] sm:$0xff]  ;;  %441 = vmatprep.mubr.msk.f32.mxu0 %vm524_vm0, %v525_v11  ;;  %452 = vmatprep.mubr.msk.f32.mxu1 %vm524_vm0, %v525_v11 }
   0x3   :  { %v462_v8 = vpack.c.bf16 %v137_v5, %v136_v2  ;;  %v138_v9 = vld [vmem:[%s698_s6 + $0x10] sm:$0xff]  ;;  %v139_v10 = vld [vmem:[%s698_s6 + $0x18] sm:$0xff]  ;;  %v611_v12 = vld [vmem:[%s692_s0] sm:$0x3]  ;;  %v459_v13 = vpack.c.bf16 %v54_v7, %v53_v6 }
   0x4   :  { %457 = vmatpush3.bf16.msra.mxu0 %v456_v4  ;;  %v616_v14 = vld [vmem:[%s693_s1] sm:$0x3]  ;;  %v465_v17 = vpack.c.bf16 %v139_v10, %v138_v9 }
   0x5   :  { %v621_v15 = vld [vmem:[%s694_s2] sm:$0x3]  ;;  %463 = vmatpush3.bf16.msra.mxu1 %v462_v8  ;;  %458 = vmatprep.subr.bf16.mxu0 %v523_v3  ;;  %v37_v18 = vrot.slane %v616_v14, 6 }
   0x6   :  { %v626_v16 = vld [vmem:[%s695_s3] sm:$0x3]  ;;  %v40_v19 = vrot.slane %v621_v15, 4  ;;  %464 = vmatprep.subr.bf16.mxu1 %v523_v3 }
   0x7   :  { %v43_v20 = vrot.slane %v626_v16, 2 }
   0x8   :  { %15 = vsyncpa [#allocation3], 0  ;;  %v46_v21 = vsel %vm45_vm1, %v611_v12, %v37_v18  ;;  %460 = vmatpush3.bf16.msra.mxu0 %v459_v13  ;;  %vm62_vm4 = vcmask 261120   ;;  %v419_v24 = vld [vmem:[%s697_s5] ss:$0 sm:$0xff]  ;;  %vm260_vm5 = vcmask 257026  }
   0x9   :  { %v48_v22 = vsel %vm47_vm2, %v46_v21, %v40_v19  ;;  %466 = vmatpush3.bf16.msra.mxu1 %v465_v17  ;;  %v421_v25 = vld [vmem:[%s699_s7] ss:$0 sm:$0xff]  ;;  %vm218_vm6 = vcmask 254976   ;;  %vm289_vm7 = vcmask 259076   ;;  %vm318_vm8 = vcmask 261126   ;;  %s530_s5 = smov 4  }
   0xa   :  { %v50_v23 = vsel %vm49_vm3, %v48_v22, %v43_v20  ;;  %vm241_vm9 = vcmask 7168   ;;  %vm243_vm10 = vcmask 15360   ;;  %vm245_vm11 = vcmask 23552   ;;  %s531_s7 = smov 8   ;;  %s532_s10 = smov 12  }
   0xb   :  { %442 = vmatmul.mubr.msk.f32.vlgmr.msra.gmra.mrb[0].mxu0 %vm62_vm4, %v50_v23  ;;  %vm277_vm12 = vcmask 27650   ;;  %vm248_vm13 = vcmask 25600   ;;  %vm306_vm14 = vcmask 29700   ;;  %vm335_vm15 = vcmask 31750   ;;  %s533_s11 = smov [#allocation2]  }
   0xc   :  { %453 = vmatmul.mubr.msk.f32.vlgmr.msra.gmra.mrb[0].mxu1 %vm62_vm4, %v50_v23  ;;  %s407_s12 = sshll.u32 %s533_s11, 4  ;;  %s408_s12 = int_to_ptr.vmem [resolvable:$true] %s407_s12 }
   0xd   :  { %s499_s13 = scalar_lea.vmem %s408_s12, 32  ;;  %p504_p1 = scmp.lt.s32.totalorder %s408_s12, %s408_s12 }
   0xe   :  { %p500_p0 = scmp.ne.s32.totalorder %s408_s12, %s499_s13  ;;  %p505_p2 = scmp.lt.s32.totalorder %s499_s13, %s499_s13 }
  0x10   :  { %p506_p3 = por %p505_p2, %p504_p1 }
  0x12   :  { %p507_p4 = pnand %p506_p3, %p500_p0 }
  0xde   :  { %v132_v26 = vpop.f32.mrb[0].mxu0 }
  0xdf   :  { %v133_v27 = vadd.f32 %v419_v24, %v132_v26  ;;  %v213_v28 = vpop.f32.mrb[0].mxu1  ;;  %v443_v29 = vpop.f32.mrb[1].mxu0 }
  0xe0   :  { %v214_v30 = vadd.f32 %v421_v25, %v213_v28  ;;  %v454_v31 = vpop.f32.mrb[1].mxu1 }
  0xe2   :  { %v223_v32 = vrot.slane %v214_v30, 2  ;;  %v229_v33 = vrot.slane %v214_v30, 4  ;;  %v235_v34 = vrot.slane %v214_v30, 6  ;;  %v217_v35 = vmul.f32 %v214_v30, %v133_v27 }
  0xe4   :  { %v264_v36 = vsel %vm260_vm5, %v217_v35, 0.0  ;;  %v219_v37 = vsel %vm218_vm6, %v217_v35, 0.0  ;;  %v237_v38 = vmul.f32 %v235_v34, %v133_v27  ;;  %v225_v39 = vmul.f32 %v223_v32, %v133_v27 }
  0xe5   :  { %265 = vadd.xlane.f32.xlu0 %v264_v36  ;;  %220 = vadd.xlane.f32.xlu1 %v219_v37  ;;  %v231_v40 = vmul.f32 %v229_v33, %v133_v27  ;;  %v296_v42 = vsel %vm289_vm7, %v217_v35, 0.0  ;;  %v328_v54 = vsel %vm318_vm8, %v217_v35, 0.0 }
  0xe6   :  { %v261_v41 = vsel %vm260_vm5, %v237_v38, 0.0  ;;  %v226_v43 = vsel %vm218_vm6, %v225_v39, 0.0  ;;  %v267_v44 = vsel %vm260_vm5, %v225_v39, 0.0  ;;  %v293_v48 = vsel %vm289_vm7, %v237_v38, 0.0 }
  0xe7   :  { %v290_v45 = vsel %vm289_vm7, %v231_v40, 0.0  ;;  %v270_v46 = vsel %vm260_vm5, %v231_v40, 0.0  ;;  %v232_v47 = vsel %vm218_vm6, %v231_v40, 0.0  ;;  %v238_v49 = vsel %vm218_vm6, %v237_v38, 0.0 }
  0xe8   :  { %v299_v50 = vsel %vm289_vm7, %v225_v39, 0.0  ;;  %v319_v51 = vsel %vm318_vm8, %v225_v39, 0.0  ;;  %v322_v52 = vsel %vm318_vm8, %v231_v40, 0.0  ;;  %v325_v53 = vsel %vm318_vm8, %v237_v38, 0.0 }
  0xe9   :  { %262 = vadd.xlane.f32.xlu0 %v261_v41  ;;  %297 = vadd.xlane.f32.xlu1 %v296_v42 }
  0xed   :  { %227 = vadd.xlane.f32.xlu0 %v226_v43  ;;  %268 = vadd.xlane.f32.xlu1 %v267_v44 }
  0xf1   :  { %291 = vadd.xlane.f32.xlu0 %v290_v45  ;;  %271 = vadd.xlane.f32.xlu1 %v270_v46 }
  0xf5   :  { %233 = vadd.xlane.f32.xlu0 %v232_v47  ;;  %294 = vadd.xlane.f32.xlu1 %v293_v48 }
  0xf9   :  { %239 = vadd.xlane.f32.xlu0 %v238_v49  ;;  %300 = vadd.xlane.f32.xlu1 %v299_v50 }
  0xfd   :  { %320 = vadd.xlane.f32.xlu0 %v319_v51  ;;  %323 = vadd.xlane.f32.xlu1 %v322_v52  ;;  %v526_v51 = vmov 1   ;;  %v527_v52 = vmov 0  }
  0xfe   :  { %479 = vset.pattern.permute.xlu1 %v526_v51  ;;  %478 = vset.pattern.permute.xlu0 %v527_v52 }
 0x101   :  { %326 = vadd.xlane.f32.xlu0 %v325_v53  ;;  %329 = vadd.xlane.f32.xlu1 %v328_v54 }
 0x172   :  { %v266_v55 = vpop.xlane.xlu0 %265  ;;  %v221_v56 = vpop.xlane.xlu1 %220 }
 0x176   :  { %v263_v57 = vpop.xlane.xlu0 %262  ;;  %v298_v58 = vpop.xlane.xlu1 %297 }
 0x177   :  { %v273_v61 = vsel %vm241_vm9, %v263_v57, %v266_v55 }
 0x17a   :  { %v228_v59 = vpop.xlane.xlu0 %227  ;;  %v269_v60 = vpop.xlane.xlu1 %268 }
 0x17b   :  { %v274_v62 = vsel %vm243_vm10, %v273_v61, %v269_v60  ;;  %v242_v7 = vsel %vm241_vm9, %v221_v56, %v228_v59 }
 0x17e   :  { %v292_v63 = vpop.xlane.xlu0 %291  ;;  %v272_v0 = vpop.xlane.xlu1 %271 }
 0x17f   :  { %v275_v1 = vsel %vm245_vm11, %v274_v62, %v272_v0 }
 0x180   :  { %v276_v2 = vmul.f32 0.17677669, %v275_v1 }
 0x182   :  { %v234_v3 = vpop.xlane.xlu0 %233  ;;  %v295_v4 = vpop.xlane.xlu1 %294  ;;  %v278_v5 = vsel %vm277_vm12, %v276_v2, -inf }
 0x183   :  { %v302_v6 = vsel %vm241_vm9, %v292_v63, %v295_v4  ;;  %279 = vmax.xlane.f32.xlu0 %v278_v5  ;;  %v244_v8 = vsel %vm243_vm10, %v242_v7, %v234_v3  ;;  %v528_v7 = vmov 2  }
 0x184   :  { %v303_v10 = vsel %vm243_vm10, %v302_v6, %v298_v58 }
 0x186   :  { %v240_v9 = vpop.xlane.xlu0 %239  ;;  %v301_v11 = vpop.xlane.xlu1 %300 }
 0x187   :  { %v246_v13 = vsel %vm245_vm11, %v244_v8, %v240_v9  ;;  %v304_v17 = vsel %vm245_vm11, %v303_v10, %v301_v11  ;;  %v529_v8 = vmov 3  }
 0x188   :  { %v247_v18 = vmul.f32 0.17677669, %v246_v13  ;;  %v305_v19 = vmul.f32 0.17677669, %v304_v17 }
 0x18a   :  { %v321_v20 = vpop.xlane.xlu0 %320  ;;  %v324_v21 = vpop.xlane.xlu1 %323  ;;  %v249_v22 = vsel %vm248_vm13, %v247_v18, -inf  ;;  %v307_v23 = vsel %vm306_vm14, %v305_v19, -inf }
 0x18b   :  { %250 = vmax.xlane.f32.xlu1 %v249_v22  ;;  %308 = vmax.xlane.f32.xlu0 %v307_v23  ;;  %v331_v24 = vsel %vm241_vm9, %v321_v20, %v324_v21 }
 0x18e   :  { %v327_v25 = vpop.xlane.xlu0 %326  ;;  %v330_v26 = vpop.xlane.xlu1 %329 }
 0x18f   :  { %v332_v27 = vsel %vm243_vm10, %v331_v24, %v327_v25 }
 0x190   :  { %v333_v28 = vsel %vm245_vm11, %v332_v27, %v330_v26 }
 0x191   :  { %v334_v29 = vmul.f32 0.17677669, %v333_v28 }
 0x193   :  { %v336_v30 = vsel %vm335_vm15, %v334_v29, -inf }
 0x194   :  { %337 = vmax.xlane.f32.xlu1 %v336_v30 }
 0x210   :  { %v280_v31 = vpop.xlane.xlu0 %279 }
 0x211   :  { %v281_v32 = vsub.f32 %v276_v2, %v280_v31 }
 0x213   :  { %v282_v33 = vmul.f32 1.442695, %v281_v32 }
 0x215   :  { %483 = vpow2.f32 %v282_v33 }
 0x218   :  { %v309_v34 = vpop.xlane.xlu0 %308  ;;  %v251_v35 = vpop.xlane.xlu1 %250 }
 0x219   :  { %v310_v36 = vsub.f32 %v305_v19, %v309_v34  ;;  %v252_v37 = vsub.f32 %v247_v18, %v251_v35 }
 0x21b   :  { %v311_v38 = vmul.f32 1.442695, %v310_v36  ;;  %v253_v39 = vmul.f32 1.442695, %v252_v37 }
 0x21d   :  { %485 = vpow2.f32 %v311_v38 }
 0x21e   :  { %487 = vpow2.f32 %v253_v39 }
 0x21f   :  { %v484_v40 = vpop.eup %483 }
 0x220   :  { %v284_v41 = vsel %vm277_vm12, %v484_v40, 0.0 }
 0x221   :  { %285 = vadd.xlane.f32.xlu0 %v284_v41  ;;  %v338_v42 = vpop.xlane.xlu1 %337 }
 0x222   :  { %v339_v43 = vsub.f32 %v334_v29, %v338_v42 }
 0x224   :  { %v340_v44 = vmul.f32 1.442695, %v339_v43 }
 0x226   :  { %489 = vpow2.f32 %v340_v44 }
 0x227   :  { %v486_v45 = vpop.eup %485 }
 0x228   :  { %v488_v46 = vpop.eup %487  ;;  %v313_v47 = vsel %vm306_vm14, %v486_v45, 0.0 }
 0x229   :  { %314 = vadd.xlane.f32.xlu0 %v313_v47  ;;  %v255_v48 = vsel %vm248_vm13, %v488_v46, 0.0 }
 0x22a   :  { %256 = vadd.xlane.f32.xlu1 %v255_v48 }
 0x230   :  { %v490_v49 = vpop.eup %489 }
 0x231   :  { %v342_v50 = vsel %vm335_vm15, %v490_v49, 0.0 }
 0x232   :  { %343 = vadd.xlane.f32.xlu1 %v342_v50 }
 0x2ae   :  { %v286_v53 = vpop.xlane.xlu0 %285 }
 0x2af   :  { %491 = vrcp.f32 %v286_v53 }
 0x2b6   :  { %v315_v54 = vpop.xlane.xlu0 %314 }
 0x2b7   :  { %493 = vrcp.f32 %v315_v54  ;;  %v257_v55 = vpop.xlane.xlu1 %256 }
 0x2b8   :  { %495 = vrcp.f32 %v257_v55 }
 0x2b9   :  { %v492_v57 = vpop.eup %491 }
 0x2ba   :  { %v288_v60 = vmul.f32 %v492_v57, %v484_v40 }
 0x2bc   :  { %v348_v63 = vrot.slane %v288_v60, 2 }
 0x2bf   :  { %v344_v56 = vpop.xlane.xlu1 %343 }
 0x2c0   :  { %497 = vrcp.f32 %v344_v56 }
 0x2c1   :  { %v494_v58 = vpop.eup %493 }
 0x2c2   :  { %v496_v59 = vpop.eup %495  ;;  %v317_v61 = vmul.f32 %v494_v58, %v486_v45 }
 0x2c3   :  { %v259_v62 = vmul.f32 %v496_v59, %v488_v46 }
 0x2c4   :  { %v352_v1 = vrot.slane %v317_v61, 4 }
 0x2c5   :  { %v350_v0 = vadd.f32 %v348_v63, %v259_v62 }
 0x2c7   :  { %v354_v4 = vadd.f32 %v352_v1, %v350_v0 }
 0x2ca   :  { %v498_v2 = vpop.eup %497 }
 0x2cb   :  { %v346_v3 = vmul.f32 %v498_v2, %v490_v49 }
 0x2cd   :  { %v356_v5 = vrot.slane %v346_v3, 6 }
 0x2cf   :  { %v358_v6 = vadd.f32 %v356_v5, %v354_v4 }
 0x2d1   :  { %366 = vperm.xlu1 %479, %v358_v6   ;;  %361 = vperm.xlu0 %478, %v358_v6  }
 0x2d5   :  { %480 = vset.pattern.permute.xlu1 %v528_v7  ;;  %482 = vset.pattern.permute.xlu0 %v529_v8 }
 0x2d6   :  { %372 = vperm.xlu1 %480, %v358_v6  }
 0x2da   :  { %481 = vset.pattern.permute.xlu1 %v529_v8 }
 0x2db   :  { %378 = vperm.xlu1 %481, %v358_v6  }
 0x2df   :  { %384 = vrot.lane.b32.xlu1 %v348_v63, %s530_s5 }
 0x2e3   :  { %387 = vrot.lane.b32.xlu1 %v352_v1, %s531_s7 }
 0x2e7   :  { %390 = vrot.lane.b32.xlu1 %v356_v5, %s532_s10 }
 0x350   :  { %v367_v9 = vpop.permute.xlu1 %366  ;;  %v362_v10 = vpop.permute.xlu0 %361 }
 0x351   :  { %v369_v11 = vmul.f32 %v367_v9, %v616_v14  ;;  %v364_v13 = vmul.f32 %v362_v10, %v611_v12 }
 0x353   :  { %v370_v19 = vadd.f32 %v369_v11, %v364_v13 }
 0x355   :  { %v373_v17 = vpop.permute.xlu1 %372 }
 0x356   :  { %v375_v18 = vmul.f32 %v373_v17, %v621_v15 }
 0x358   :  { %v376_v21 = vadd.f32 %v375_v18, %v370_v19 }
 0x35a   :  { %v379_v20 = vpop.permute.xlu1 %378 }
 0x35b   :  { %v381_v22 = vmul.f32 %v379_v20, %v626_v16 }
 0x35d   :  { %v382_v23 = vadd.f32 %v381_v22, %v376_v21 }
 0x35e   :  { %v385_v24 = vpop.permute.xlu1 %384 }
 0x35f   :  { %383 = vst.msk [vmem:[#allocation2] sm:$0x3] %vm218_vm6, %v382_v23 }
 0x360   :  { %510 = shalt.err (!%p507_p4)
}
 0x361   :  { %s511_s16 = scalar_lea.hbm %s700_s8, 32 }
 0x362   :  { %p512_p5 = scmp.ne.s32.totalorder %s700_s8, %s511_s16  ;;  %p515_p6 = scmp.lt.u32.totalorder %s511_s16, %s700_s8 }
 0x364   :  { %p517_p7 = pnand %p515_p6, %p512_p5 }
 0x366   :  { %520 = shalt.err (!%p517_p7)
}
 0x367   :  { %410 = dma.vmem_to_hbm [thread:$0]  %s408_s12, 32, %s700_s8, [#allocation3]   ;;  %vm393_vm0 = vcmask 31744   ;;  %v388_v12 = vpop.permute.xlu1 %387  ;;  %vm395_vm1 = vcmask 64512   ;;  %vm397_vm2 = vcmask 97280   ;;  %vm399_vm3 = vcmask 123904  }
 0x368   :  { %v394_v14 = vsel %vm393_vm0, %v259_v62, %v385_v24 }
 0x369   :  { %v396_v15 = vsel %vm395_vm1, %v394_v14, %v388_v12 }
 0x36b   :  { %v391_v16 = vpop.permute.xlu1 %390 }
 0x36c   :  { %v398_v25 = vsel %vm397_vm2, %v396_v15, %v391_v16 }
 0x36d   :  { %400 = vst.msk [vmem:[%s701_s9] sm:$0x3] %vm399_vm3, %v398_v25 }
 0x36e   :  { %521 = dma.done.wait [#allocation3], 32  }
 0x36f   :  { %522 = vsyncadd [#allocation3], 4294967264 }
 0x370   :  { %418 = vsyncpa [#allocation3], 1 }

</bundles_post_ra>
